<compile_context>
chip_gen: v7x
topology: tpu7x:2x2x1
jax: 0.10.0
libtpu: 0.0.40
codegen_flags: <defaults>
</compile_context>

<pallas_src>
import jax
import jax.numpy as jnp
from jax.experimental import pallas as pl
from jax.experimental.pallas import tpu as pltpu


def _ae_forward_kernel(x_ref, o_ref):
    # encoder: empty nn.Sequential -> identity
    encoded = x_ref[...]
    # decoder: empty nn.Sequential -> identity
    o_ref[...] = encoded
    # TODO(synk): if layers are ever added to encoder/decoder, insert their
    # matmul/activation compute here between the two identity stages.


def _round_up(n, m):
    return ((n + m - 1) // m) * m


def _canonical_2d(x):
    """Flatten x into a lane-dense 2D [rows, lanes] view (reshape is cheap)."""
    total = x.size
    for lanes in (512, 256, 128):
        if total % lanes == 0:
            return x.reshape(total // lanes, lanes)
    # Fallback: one full-width row. Block dims equal the full array dims, so
    # the (8,128)-or-full-dim rule is satisfied; only edge stores are masked.
    return x.reshape(1, total)


def ae_forward(x, *, target_block_bytes=2 * 1024 * 1024):
    """Pallas implementation of AE.forward (empty encoder/decoder => identity)."""
    orig_shape = x.shape
    x2 = _canonical_2d(x)
    rows, lanes = x2.shape
    itemsize = jnp.dtype(x.dtype).itemsize

    # dtype-aware sublane packing: 4B -> 8 rows/vreg, 2B -> 16, 1B -> 32.
    row_mult = 8 * max(1, 4 // itemsize)

    bytes_per_row = lanes * itemsize
    max_tile_rows = target_block_bytes // max(1, bytes_per_row)

    if max_tile_rows >= rows:
        if rows <= row_mult:
            tile_rows = rows  # single tiny block; row dim == full dim is legal
        else:
            # Whole array fits in the block budget: still split into >= 2 grid
            # steps so the parallel axis can shard across v7x's 2 TensorCores.
            tile_rows = _round_up(pl.cdiv(rows, 2), row_mult)
    else:
        tile_rows = max(row_mult, (max_tile_rows // row_mult) * row_mult)

    grid = (pl.cdiv(rows, tile_rows),)

    out2 = pl.pallas_call(
        _ae_forward_kernel,
        out_shape=jax.ShapeDtypeStruct((rows, lanes), x.dtype),
        grid_spec=pltpu.PrefetchScalarGridSpec(
            num_scalar_prefetch=0,
            grid=grid,
            in_specs=[pl.BlockSpec((tile_rows, lanes), lambda i: (i, 0))],
            out_specs=pl.BlockSpec((tile_rows, lanes), lambda i: (i, 0)),
        ),
        # Identity passthrough: alias the input HBM buffer to the output.
        input_output_aliases={0: 0},
        compiler_params=pltpu.CompilerParams(
            dimension_semantics=("parallel",),
        ),
    )(x2)
    return out2.reshape(orig_shape)


def ae_get_bottleneck(x):
    """Pallas implementation of AE.get_bottleneck (encoder only = identity)."""
    return ae_forward(x)


if __name__ == "__main__":
    key = jax.random.PRNGKey(0)

    # Small flat-autoencoder style input: batch=16, features=128, float32
    # (matches the .float() cast in AE.fit's data pipeline).
    x = jax.random.normal(key, (16, 128), dtype=jnp.float32)
    decoded = jax.block_until_ready(ae_forward(x))
    assert decoded.shape == x.shape
    assert decoded.dtype == x.dtype
    assert bool(jnp.all(decoded == x))

    bottleneck = jax.block_until_ready(ae_get_bottleneck(x))
    assert bool(jnp.all(bottleneck == x))

    # dtype-aware tile path (bf16 -> 16-row sublane multiple).
    xb = jax.random.normal(key, (32, 96), dtype=jnp.bfloat16)
    db = jax.block_until_ready(ae_forward(xb))
    assert db.shape == xb.shape and db.dtype == xb.dtype
    assert bool(jnp.all(db == xb))

    # Non-128-multiple total size exercises the full-dim fallback block.
    xo = jax.random.normal(key, (3, 7), dtype=jnp.float32)
    do = jax.block_until_ready(ae_forward(xo))
    assert do.shape == xo.shape and bool(jnp.all(do == xo))

    print("KERNEL_OK")
</pallas_src>

<mosaic_0001>
module attributes {stable_mosaic.version = 11 : i64} {
  func.func @_ae_forward_kernel(%arg0: i32, %arg1: memref<4x512xf32, #tpu.memory_space<vmem>>, %arg2: memref<4x512xf32, #tpu.memory_space<vmem>>) attributes {dimension_semantics = [#tpu.dimension_semantics<parallel>], iteration_bounds = array<i64: 1>, scalar_prefetch = 0 : i64, scratch_operands = 0 : i64, tpu.core_type = #tpu.core_type<tc>, window_params = [{transform_indices = @transform_0, window_bounds = array<i64: 4, 512>}, {transform_indices = @transform_1, window_bounds = array<i64: 4, 512>}]} {
    %c0 = arith.constant 0 : index
    %c0_0 = arith.constant 0 : index
    %0 = vector.load %arg1[%c0, %c0_0] : memref<4x512xf32, #tpu.memory_space<vmem>>, vector<4x512xf32>
    %c0_1 = arith.constant 0 : index
    %c0_2 = arith.constant 0 : index
    %1 = vector.load %arg2[%c0_1, %c0_2] : memref<4x512xf32, #tpu.memory_space<vmem>>, vector<4x512xf32>
    tpu.vector_store %arg2[%c0_1, %c0_2], %0 {strides = array<i32>} : memref<4x512xf32, #tpu.memory_space<vmem>>, vector<4x512xf32>,
    return
  }
  func.func @transform_0(%arg0: i32) -> (i32, i32) {
    %c0_i32 = arith.constant 0 : i32
    %c0_i32_0 = arith.constant 0 : i32
    return %arg0, %c0_i32 : i32, i32
  }
  func.func @transform_1(%arg0: i32) -> (i32, i32) {
    %c0_i32 = arith.constant 0 : i32
    %c0_i32_0 = arith.constant 0 : i32
    return %arg0, %c0_i32 : i32, i32
  }
}

</mosaic_0001>

<bundles_post_ra>
// kernel: tpu_custom_call.1
= control target key start
LH: loop header
LB: loop body
LE: loop exit
PB: predicated region body
PF: predicated region fallthrough
CT: control target
= control target key end

     0   :  { %6 = vsyncpa [#allocation3], 0  ;;  %s126_s0 = inlined_call_operand.hbm [shape: f32[4,512], index: 0, kind: input, shape index: {}, may-alias: {0,1}]   ;;  %s127_s1 = inlined_call_operand.hbm [shape: f32[4,512], index: 1, kind: output, shape index: {}, may-alias: {0,1}]  }
   0x1   :  { %7 = vsyncpa [#allocation4], 0  ;;  %s90_s6 = smov [#allocation2]   ;;  %s42_s10 = scalar_lea.hbm %s126_s0, 256 }
   0x2   :  { %s14_s7 = sshll.u32 %s90_s6, 4  ;;  %p43_p0 = scmp.ne.s32.totalorder %s126_s0, %s42_s10  ;;  %s15_s7 = int_to_ptr.vmem [resolvable:$true] %s14_s7 }
   0x3   :  { %p46_p1 = scmp.lt.u32.totalorder %s42_s10, %s126_s0 }
   0x5   :  { %p48_p2 = pnand %p46_p1, %p43_p0 }
   0x7   :  { %51 = shalt.err (!%p48_p2)
}
   0x8   :  { %s52_s15 = scalar_lea.vmem %s15_s7, 256  ;;  %p57_p4 = scmp.lt.s32.totalorder %s15_s7, %s15_s7 }
   0x9   :  { %p53_p3 = scmp.ne.s32.totalorder %s15_s7, %s52_s15  ;;  %p58_p5 = scmp.lt.s32.totalorder %s52_s15, %s52_s15 }
   0xb   :  { %p59_p6 = por %p58_p5, %p57_p4 }
   0xd   :  { %p60_p7 = pnand %p59_p6, %p53_p3 }
   0xf   :  { %63 = shalt.err (!%p60_p7)
}
  0x10   :  { %17 = dma.hbm_to_vmem [thread:$0]  %s126_s0, 256, %s15_s7, [#allocation3]  }
  0x11   :  { %86 = dma.done.wait [#allocation3], 256  }
  0x12   :  { %87 = vsyncadd [#allocation3], 4294967040  ;;  %s91_s18 = smov [#allocation5]   ;;  %v21_v0 = vld [vmem:[#allocation2] sm:$0xff]  ;;  %v22_v1 = vld [vmem:[#allocation2 + $0x8] sm:$0xff] }
  0x13   :  { %s31_s19 = sshll.u32 %s91_s18, 4  ;;  %23 = vst [vmem:[#allocation5] sm:$0xff] %v21_v0  ;;  %24 = vst [vmem:[#allocation5 + $0x8] sm:$0xff] %v22_v1  ;;  %s32_s19 = int_to_ptr.vmem [resolvable:$true] %s31_s19 }
  0x14   :  { %s64_s20 = scalar_lea.vmem %s32_s19, 256  ;;  %p69_p9 = scmp.lt.s32.totalorder %s32_s19, %s32_s19 }
  0x15   :  { %p65_p8 = scmp.ne.s32.totalorder %s32_s19, %s64_s20  ;;  %p70_p10 = scmp.lt.s32.totalorder %s64_s20, %s64_s20 }
  0x17   :  { %p71_p11 = por %p70_p10, %p69_p9 }
  0x19   :  { %p72_p12 = pnand %p71_p11, %p65_p8 }
  0x1b   :  { %75 = shalt.err (!%p72_p12)
}
  0x1c   :  { %s76_s0 = scalar_lea.hbm %s127_s1, 256 }
  0x1d   :  { %p77_p13 = scmp.ne.s32.totalorder %s127_s1, %s76_s0  ;;  %p80_p0 = scmp.lt.u32.totalorder %s76_s0, %s127_s1 }
  0x1f   :  { %p82_p1 = pnand %p80_p0, %p77_p13 }
  0x21   :  { %85 = shalt.err (!%p82_p1)
}
  0x22   :  { %34 = dma.vmem_to_hbm [thread:$0]  %s32_s19, 256, %s127_s1, [#allocation4]  }
  0x23   :  { %88 = dma.done.wait [#allocation4], 256  }
  0x24   :  { %89 = vsyncadd [#allocation4], 4294967040 }
  0x25   :  { %38 = vsyncpa [#allocation3], 1 }
  0x26   :  { %39 = vsyncpa [#allocation4], 1 }

</bundles_post_ra>
